<compile_context>
chip_gen: v7x
topology: tpu7x:2x2x1
jax: 0.10.0
libtpu: 0.0.40
codegen_flags: <defaults>
</compile_context>

<pallas_src>
import functools
import math
from typing import NamedTuple

import jax
import jax.numpy as jnp
from jax.experimental import pallas as pl
from jax.experimental.pallas import tpu as pltpu


def _round_up(x, m):
    return ((x + m - 1) // m) * m


def _pad_to(x, target_shape):
    """Zero-pad `x` up to `target_shape`; no-op if already that shape."""
    pads = tuple((0, t - s) for s, t in zip(x.shape, target_shape))
    if any(p for _, p in pads):
        x = jnp.pad(x, pads)
    return x


def _vmem_capacity_bytes():
    try:
        return int(pltpu.get_tpu_info().vmem_capacity_bytes)
    except Exception:
        return 128 * 1024 * 1024   # v5e / v6e default; v7x reports 64 MiB


class CrossAttentionParams(NamedTuple):
    """One-time prepped parameters (padding / fusion / scale-fold hoisted)."""
    wq: jax.Array      # (d_in_p, d_kq_p), scale folded in, compute dtype
    wkv: jax.Array     # (d_in_p, d_kq_p + d_v_p) fused [W_key | W_value]
    d_in: int
    d_out_kq: int
    d_out_v: int
    d_in_p: int
    d_kq_p: int
    d_v_p: int
    use_bf16: bool


def prepare_cross_attention_params(w_query, w_key, w_value, *, use_bf16=True):
    d_in, dkq = w_query.shape
    dv = w_value.shape[1]
    d_inp = _round_up(d_in, 128)
    dkqp = _round_up(dkq, 128)
    dvp = _round_up(dv, 128)
    scale = 1.0 / math.sqrt(dkq)
    compute_dtype = jnp.bfloat16 if use_bf16 else jnp.float32
    # Fold the 1/sqrt(d_out_kq) scale into W_query (removes a per-tile VPU mul).
    wq = (_pad_to(w_query, (d_inp, dkqp)) * jnp.float32(scale)).astype(compute_dtype)
    wkv = jnp.concatenate(
        [_pad_to(w_key, (d_inp, dkqp)), _pad_to(w_value, (d_inp, dvp))],
        axis=1).astype(compute_dtype)
    return CrossAttentionParams(wq, wkv, d_in, dkq, dv, d_inp, dkqp, dvp, use_bf16)


def _cross_attention_kernel(x1_ref, x2_ref, wq_ref, wkv_ref, bias_ref,
                            attn_ref, ctx_ref, kv_ref, *,
                            dkq_pad, s2_out, dv_out, mask_keys, approx_recip,
                            compute_dtype):
    # Block shapes (lane/sublane aligned by the wrapper):
    #   x1_ref  : (TB, TS1, d_in_p)            queries
    #   x2_ref  : (TB, S2_p, d_in_p)           keys/values (resident across S1 tiles)
    #   wq_ref  : (d_in_p, d_kq_p)             scaled, padded W_query
    #   wkv_ref : (d_in_p, d_kq_p + d_v_p)     fused padded [W_key | W_value]
    #   bias_ref: (1, S2_p)                    additive key-pad mask (f32)
    #   attn_ref: (TB, TS1, S2)  ctx_ref: (TB, TS1, d_out_v)   true-width outputs
    #   kv_ref  : (TB, S2_p, d_kq_p + d_v_p)   VMEM scratch, persists over S1 tiles
    tb, ts1, dinp = x1_ref.shape
    _, s2p, _ = x2_ref.shape

    # K|V projection once per batch tile; reused across all S1 tiles.
    @pl.when(pl.program_id(1) == 0)
    def _():
        x2 = x2_ref[...].reshape(tb * s2p, dinp)
        kv = jnp.dot(x2, wkv_ref[...], preferred_element_type=jnp.float32)
        kv_ref[...] = kv.reshape(tb, s2p, kv.shape[-1]).astype(kv_ref.dtype)

    # Q projection (scale already folded into wq). bf16 MXU inputs, f32 acc.
    x1 = x1_ref[...].reshape(tb * ts1, dinp)
    q = jnp.dot(x1, wq_ref[...], preferred_element_type=jnp.float32)
    q = q.reshape(tb, ts1, dkq_pad).astype(compute_dtype)

    kv = kv_ref[...]
    k = kv[:, :, :dkq_pad]          # lane-aligned split (dkq_pad % 128 == 0)
    v = kv[:, :, dkq_pad:]

    # Scores: contract the feature axis directly (no explicit k.T), bf16 MXU
    # operands, f32 accumulation.
    scores = jnp.einsum('bqc,bkc->bqk', q, k,
                        preferred_element_type=jnp.float32)
    if mask_keys:
        # Precomputed additive bias row: 0 for real keys, -1e30 for padding.
        scores = scores + bias_ref[...].reshape(1, 1, s2p)

    # Numerically stable softmax in f32.
    m = jnp.max(scores, axis=-1, keepdims=True)
    p = jnp.exp(scores - m)
    denom = jnp.sum(p, axis=-1, keepdims=True)
    if approx_recip:
        attn = p * pl.reciprocal(denom, approx=True)   # EUP slot, ~free next to exp
    else:
        attn = p / denom                               # exact path for f32 mode

    # Context: bf16 MXU operands (attn cast, v already bf16), f32 accumulation.
    ctx = jnp.einsum('bqk,bkd->bqd', attn.astype(compute_dtype), v,
                     preferred_element_type=jnp.float32)

    # True-width stores (masked vst for narrow dims — far fewer HBM bytes than
    # writing the 128-padded widths for the decode workload).
    attn_ref[...] = attn[:, :, :s2_out].astype(attn_ref.dtype)
    ctx_ref[...] = ctx[:, :, :dv_out].astype(ctx_ref.dtype)


def _pick_tiles(B, S1, s2p, d_inp, dkqp, dvp, s2_out, dv_out,
                in_size, out_size, compute_size, vmem_budget,
                block_s1, block_b):
    if block_b is None:
        block_b = min(B, 8)
    block_b = max(1, min(block_b, B))
    if block_s1 is None:
        block_s1 = min(_round_up(S1, 8), 512)
    block_s1 = max(8, _round_up(block_s1, 8))

    def est(bb, bs1):
        # double-buffered pipeline blocks
        buffered = 2 * (bb * bs1 * d_inp * in_size            # x1
                        + bb * s2p * d_inp * in_size          # x2
                        + d_inp * dkqp * in_size              # wq
                        + d_inp * (dkqp + dvp) * in_size      # wkv
                        + s2p * 4                             # bias
                        + bb * bs1 * s2_out * out_size        # attn out
                        + bb * bs1 * dv_out * out_size)       # ctx out
        scratch = bb * s2p * (dkqp + dvp) * compute_size      # kv scratch
        # f32 intermediates: q + ~3x score-sized temporaries + ctx
        inter = bb * bs1 * (dkqp + 3 * s2p + dvp) * 4
        return buffered + scratch + inter

    while est(block_b, block_s1) > vmem_budget and block_s1 > 8:
        block_s1 = max(8, _round_up(block_s1 // 2, 8))
    while est(block_b, block_s1) > vmem_budget and block_b > 1:
        block_b = max(1, block_b // 2)
    return block_b, block_s1


def cross_attention(x_1, x_2, w_query=None, w_key=None, w_value=None, *,
                    params=None, block_s1=None, block_b=None, use_bf16=True):
    """Pallas TPU implementation of CrossAttention.forward.

    Returns (attn_weights [B,S1,S2], context_vec [B,S1,d_out_v]).
    Pass `params=prepare_cross_attention_params(...)` to amortize weight prep
    across decode steps.
    """
    if params is None:
        params = prepare_cross_attention_params(w_query, w_key, w_value,
                                                use_bf16=use_bf16)
    if x_2.ndim == 2:
        x_2 = x_2[:, None, :]          # == x_2.unsqueeze(1)

    B, S1, d_in = x_1.shape
    B2, S2, d_in2 = x_2.shape
    assert B == B2 and d_in == params.d_in and d_in2 == params.d_in

    out_dtype = x_1.dtype
    d_inp, dkqp, dvp = params.d_in_p, params.d_kq_p, params.d_v_p
    dv = params.d_out_v
    s2p = _round_up(S2, 128)
    compute_dtype = jnp.bfloat16 if params.use_bf16 else jnp.float32
    in_size = jnp.dtype(compute_dtype).itemsize
    out_size = jnp.dtype(out_dtype).itemsize

    # ---- tile sizing against the actual chip VMEM ---------------------------
    vmem_cap = _vmem_capacity_bytes()
    vmem_budget = vmem_cap // 2
    block_b, block_s1 = _pick_tiles(B, S1, s2p, d_inp, dkqp, dvp, S2, dv,
                                    in_size, out_size, in_size, vmem_budget,
                                    block_s1, block_b)
    bp = _round_up(B, block_b)
    s1p = _round_up(S1, block_s1)
    vmem_limit = max(32 * 1024 * 1024,
                     min(vmem_cap * 3 // 4, 96 * 1024 * 1024))

    # ---- pad (+ cast to the MXU dtype; fuses with the pad copy) -------------
    x1p = _pad_to(x_1, (bp, s1p, d_inp)).astype(compute_dtype)
    x2p = _pad_to(x_2, (bp, s2p, d_inp)).astype(compute_dtype)

    mask_keys = S2 < s2p
    if mask_keys:
        bias = jnp.where(jnp.arange(s2p) >= S2,
                         jnp.float32(-1e30), jnp.float32(0.0)).reshape(1, s2p)
    else:
        bias = jnp.zeros((1, s2p), jnp.float32)

    grid = (bp // block_b, s1p // block_s1)

    kernel = functools.partial(
        _cross_attention_kernel,
        dkq_pad=dkqp, s2_out=S2, dv_out=dv,
        mask_keys=mask_keys, approx_recip=params.use_bf16,
        compute_dtype=compute_dtype)

    grid_spec = pltpu.PrefetchScalarGridSpec(
        num_scalar_prefetch=0,
        grid=grid,
        in_specs=[
            # x_1: tiled over batch and S1.
            pl.BlockSpec((block_b, block_s1, d_inp), lambda b, s: (b, s, 0)),
            # x_2 / weights / bias: index maps ignore the inner S1 axis ->
            # blocks stay resident in VMEM across all S1 tiles of a batch tile.
            pl.BlockSpec((block_b, s2p, d_inp), lambda b, s: (b, 0, 0)),
            pl.BlockSpec((d_inp, dkqp), lambda b, s: (0, 0)),
            pl.BlockSpec((d_inp, dkqp + dvp), lambda b, s: (0, 0)),
            pl.BlockSpec((1, s2p), lambda b, s: (0, 0)),
        ],
        out_specs=[
            # True last-dim widths (full-dim blocks, legal even when < 128).
            pl.BlockSpec((block_b, block_s1, S2), lambda b, s: (b, s, 0)),
            pl.BlockSpec((block_b, block_s1, dv), lambda b, s: (b, s, 0)),
        ],
        scratch_shapes=[
            # K|V projection, reused across S1 tiles of a batch tile.
            pltpu.VMEM((block_b, s2p, dkqp + dvp), compute_dtype),
        ],
    )

    # Advisory cost estimate — padded shapes, actual itemsizes.
    flops = 2 * (bp * s1p * d_inp * dkqp                 # Q projection
                 + bp * s2p * d_inp * (dkqp + dvp)       # K|V projection (1x / batch tile)
                 + bp * s1p * s2p * dkqp                 # scores
                 + bp * s1p * s2p * dvp)                 # context
    bytes_accessed = (in_size * (bp * s1p * d_inp + bp * s2p * d_inp
                                 + d_inp * (2 * dkqp + dvp))
                      + out_size * bp * s1p * (S2 + dv)
                      + 4 * s2p)
    cost = pl.CostEstimate(flops=int(flops),
                           transcendentals=int(bp * s1p * s2p),
                           bytes_accessed=int(bytes_accessed))

    attn_p, ctx_p = pl.pallas_call(
        kernel,
        grid_spec=grid_spec,
        out_shape=(
            jax.ShapeDtypeStruct((bp, s1p, S2), out_dtype),
            jax.ShapeDtypeStruct((bp, s1p, dv), out_dtype),
        ),
        compiler_params=pltpu.CompilerParams(
            # S1 axis is "arbitrary" (kv scratch reuse); batch stays "parallel"
            # so v7x can shard batch tiles across its 2 TensorCores.
            dimension_semantics=("parallel", "arbitrary"),
            vmem_limit_bytes=int(vmem_limit)),
        cost_estimate=cost,
    )(x1p, x2p, params.wq, params.wkv, bias)

    # Only batch / S1 padding (if any) needs slicing; minor dims are true-width.
    if bp != B or s1p != S1:
        attn_p = attn_p[:B, :S1]
        ctx_p = ctx_p[:B, :S1]
    return attn_p, ctx_p


def _reference(x_1, x_2, w_query, w_key, w_value):
    """Pure-JAX reference mirroring the PyTorch forward."""
    if x_2.ndim == 2:
        x_2 = x_2[:, None, :]
    d_out_kq = w_query.shape[1]
    q = x_1 @ w_query
    k = x_2 @ w_key
    v = x_2 @ w_value
    scores = jnp.einsum("bqd,bkd->bqk", q, k)
    w = jax.nn.softmax(scores / (d_out_kq ** 0.5), axis=-1)
    ctx = w @ v
    return w, ctx


if __name__ == "__main__":
    # Small shapes consistent with AttentionDecoder's forward_step:
    # x_1 = encoder_output [B, S1, hidden], x_2 = decoder_out [B, S2, hidden].
    batch = 2
    seq_len_1 = 8      # query sequence length
    seq_len_2 = 4      # key/value sequence length
    d_in = 32          # hidden_size
    d_out_kq = 16
    d_out_v = 16

    key = jax.random.PRNGKey(0)
    k_x1, k_x2, k_wq, k_wk, k_wv = jax.random.split(key, 5)

    x_1 = jax.random.normal(k_x1, (batch, seq_len_1, d_in), dtype=jnp.float32)
    x_2 = jax.random.normal(k_x2, (batch, seq_len_2, d_in), dtype=jnp.float32)

    # Parameters: uniform [0, 1), matching torch.rand's distribution.
    w_query = jax.random.uniform(k_wq, (d_in, d_out_kq), dtype=jnp.float32)
    w_key = jax.random.uniform(k_wk, (d_in, d_out_kq), dtype=jnp.float32)
    w_value = jax.random.uniform(k_wv, (d_in, d_out_v), dtype=jnp.float32)

    ref_w, ref_c = _reference(x_1, x_2, w_query, w_key, w_value)

    # ---- f32 path: strict check against the PyTorch-equivalent reference ----
    params_f32 = prepare_cross_attention_params(w_query, w_key, w_value,
                                                use_bf16=False)
    attn_f32, ctx_f32 = cross_attention(x_1, x_2, params=params_f32)
    jax.block_until_ready((attn_f32, ctx_f32))
    assert attn_f32.shape == (batch, seq_len_1, seq_len_2)
    assert ctx_f32.shape == (batch, seq_len_1, d_out_v)
    assert jnp.allclose(attn_f32, ref_w, atol=5e-3, rtol=5e-3)
    assert jnp.allclose(ctx_f32, ref_c, atol=2e-2, rtol=2e-2)

    # ---- bf16 MXU path (default): bf16 operands on all three matmuls --------
    # (f32 accumulation + f32 softmax; looser tolerances expected from bf16
    # score rounding and the approximate EUP reciprocal.)
    params_bf16 = prepare_cross_attention_params(w_query, w_key, w_value,
                                                 use_bf16=True)
    attn_bf, ctx_bf = cross_attention(x_1, x_2, params=params_bf16)
    jax.block_until_ready((attn_bf, ctx_bf))
    assert attn_bf.shape == (batch, seq_len_1, seq_len_2)
    assert ctx_bf.shape == (batch, seq_len_1, d_out_v)
    assert jnp.allclose(attn_bf, ref_w, atol=1e-1, rtol=1e-1)
    assert jnp.allclose(ctx_bf, ref_c, atol=2.5e-1, rtol=1e-1)

    # ---- the decode-shaped call AttentionDecoder actually makes (2-D x_2) ---
    x_2_step = jax.random.normal(k_x2, (batch, d_in), dtype=jnp.float32)
    attn_step, ctx_step = cross_attention(x_1, x_2_step, params=params_bf16)
    jax.block_until_ready((attn_step, ctx_step))
    assert attn_step.shape == (batch, seq_len_1, 1)
    assert ctx_step.shape == (batch, seq_len_1, d_out_v)
    ref_ws, ref_cs = _reference(x_1, x_2_step, w_query, w_key, w_value)
    assert jnp.allclose(attn_step, ref_ws, atol=1e-1, rtol=1e-1)
    assert jnp.allclose(ctx_step, ref_cs, atol=2.5e-1, rtol=1e-1)

    print("KERNEL_OK")
</pallas_src>

<mosaic_0001>
module attributes {stable_mosaic.version = 11 : i64} {
  func.func @_cross_attention_kernel(%arg0: i32, %arg1: i32, %arg2: memref<2x8x128xf32, #tpu.memory_space<vmem>>, %arg3: memref<2x128x128xf32, #tpu.memory_space<vmem>>, %arg4: memref<128x128xf32, #tpu.memory_space<vmem>>, %arg5: memref<128x256xf32, #tpu.memory_space<vmem>>, %arg6: memref<1x128xf32, #tpu.memory_space<vmem>>, %arg7: memref<2x8x4xf32, #tpu.memory_space<vmem>>, %arg8: memref<2x8x16xf32, #tpu.memory_space<vmem>>, %arg9: memref<2x128x256xf32, #tpu.memory_space<vmem>>) attributes {dimension_semantics = [#tpu.dimension_semantics<parallel>, #tpu.dimension_semantics<arbitrary>], iteration_bounds = array<i64: 1, 1>, scalar_prefetch = 0 : i64, scratch_operands = 1 : i64, tpu.core_type = #tpu.core_type<tc>, window_params = [{transform_indices = @transform_0, window_bounds = array<i64: 2, 8, 128>}, {transform_indices = @transform_1, window_bounds = array<i64: 2, 128, 128>}, {pipeline_mode = #tpu.pipeline_mode<synchronous>, transform_indices = @transform_2, window_bounds = array<i64: 128, 128>}, {pipeline_mode = #tpu.pipeline_mode<synchronous>, transform_indices = @transform_3, window_bounds = array<i64: 128, 256>}, {pipeline_mode = #tpu.pipeline_mode<synchronous>, transform_indices = @transform_4, window_bounds = array<i64: 1, 128>}, {transform_indices = @transform_5, window_bounds = array<i64: 2, 8, 4>}, {transform_indices = @transform_6, window_bounds = array<i64: 2, 8, 16>}]} {
    %c0_i32 = arith.constant 0 : i32
    %0 = arith.cmpi eq, %arg1, %c0_i32 : i32
    %1 = arith.extui %0 : i1 to i32
    %c0_i32_0 = arith.constant 0 : i32
    %2 = arith.cmpi ne, %1, %c0_i32_0 : i32
    scf.if %2 {
      %c0_20 = arith.constant 0 : index
      %c0_21 = arith.constant 0 : index
      %c0_22 = arith.constant 0 : index
      %30 = vector.load %arg3[%c0_20, %c0_21, %c0_22] : memref<2x128x128xf32, #tpu.memory_space<vmem>>, vector<2x128x128xf32>
      %31 = vector.shape_cast %30 : vector<2x128x128xf32> to vector<256x128xf32>
      %c0_23 = arith.constant 0 : index
      %c0_24 = arith.constant 0 : index
      %32 = vector.load %arg5[%c0_23, %c0_24] : memref<128x256xf32, #tpu.memory_space<vmem>>, vector<128x256xf32>
      %cst_25 = arith.constant dense<0.000000e+00> : vector<256x256xf32>
      %33 = tpu.matmul %31, %32, %cst_25 {dimension_numbers = #tpu.dot_dimension_numbers<[1], [0], [0], [1], [0, 0, 1, 1], [], []>} : vector<256x128xf32>, vector<128x256xf32>, vector<256x256xf32> -> vector<256x256xf32>
      %34 = vector.shape_cast %33 : vector<256x256xf32> to vector<2x128x256xf32>
      %c0_26 = arith.constant 0 : index
      %c0_27 = arith.constant 0 : index
      %c0_28 = arith.constant 0 : index
      %35 = vector.load %arg9[%c0_26, %c0_27, %c0_28] : memref<2x128x256xf32, #tpu.memory_space<vmem>>, vector<2x128x256xf32>
      tpu.vector_store %arg9[%c0_26, %c0_27, %c0_28], %34 {strides = array<i32>} : memref<2x128x256xf32, #tpu.memory_space<vmem>>, vector<2x128x256xf32>,
    } else {
    }
    %c0 = arith.constant 0 : index
    %c0_1 = arith.constant 0 : index
    %c0_2 = arith.constant 0 : index
    %3 = vector.load %arg2[%c0, %c0_1, %c0_2] : memref<2x8x128xf32, #tpu.memory_space<vmem>>, vector<2x8x128xf32>
    %4 = vector.shape_cast %3 : vector<2x8x128xf32> to vector<16x128xf32>
    %c0_3 = arith.constant 0 : index
    %c0_4 = arith.constant 0 : index
    %5 = vector.load %arg4[%c0_3, %c0_4] : memref<128x128xf32, #tpu.memory_space<vmem>>, vector<128x128xf32>
    %cst = arith.constant dense<0.000000e+00> : vector<16x128xf32>
    %6 = tpu.matmul %4, %5, %cst {dimension_numbers = #tpu.dot_dimension_numbers<[1], [0], [0], [1], [0, 0, 1, 1], [], []>} : vector<16x128xf32>, vector<128x128xf32>, vector<16x128xf32> -> vector<16x128xf32>
    %7 = vector.shape_cast %6 : vector<16x128xf32> to vector<2x8x128xf32>
    %c0_5 = arith.constant 0 : index
    %c0_6 = arith.constant 0 : index
    %c0_7 = arith.constant 0 : index
    %8 = vector.load %arg9[%c0_5, %c0_6, %c0_7] : memref<2x128x256xf32, #tpu.memory_space<vmem>>, vector<2x128x256xf32>
    %9 = vector.extract_strided_slice %8 {offsets = [0, 0, 0], sizes = [2, 128, 128], strides = [1, 1, 1]} : vector<2x128x256xf32> to vector<2x128x128xf32>
    %10 = vector.extract_strided_slice %8 {offsets = [0, 0, 128], sizes = [2, 128, 128], strides = [1, 1, 1]} : vector<2x128x256xf32> to vector<2x128x128xf32>
    "tpu.trace_start"() <{level = 10 : i32, message = "bqc,bkc->bqk"}> : () -> ()
    %cst_8 = arith.constant dense<0.000000e+00> : vector<2x8x128xf32>
    %11 = tpu.matmul %7, %9, %cst_8 {dimension_numbers = #tpu.dot_dimension_numbers<[2], [2], [1], [1], [0, 0, 0, 1, 1, 1], [0], [0]>} : vector<2x8x128xf32>, vector<2x128x128xf32>, vector<2x8x128xf32> -> vector<2x8x128xf32>
    "tpu.trace_stop"() : () -> ()
    %c0_9 = arith.constant 0 : index
    %c0_10 = arith.constant 0 : index
    %12 = vector.load %arg6[%c0_9, %c0_10] : memref<1x128xf32, #tpu.memory_space<vmem>>, vector<1x128xf32>
    %13 = vector.shape_cast %12 : vector<1x128xf32> to vector<1x1x128xf32>
    %14 = vector.broadcast %13 : vector<1x1x128xf32> to vector<2x8x128xf32>
    %15 = arith.addf %11, %14 : vector<2x8x128xf32>
    %cst_11 = arith.constant dense<0xFF800000> : vector<2x8xf32>
    %16 = vector.multi_reduction <maximumf>, %15, %cst_11 [2] : vector<2x8x128xf32> to vector<2x8xf32>
    %17 = vector.shape_cast %16 : vector<2x8xf32> to vector<2x8x1xf32>
    %18 = vector.broadcast %17 : vector<2x8x1xf32> to vector<2x8x128xf32>
    %19 = arith.subf %15, %18 : vector<2x8x128xf32>
    %20 = math.exp %19 : vector<2x8x128xf32>
    %cst_12 = arith.constant dense<0.000000e+00> : vector<2x8xf32>
    %21 = vector.multi_reduction <add>, %20, %cst_12 [2] : vector<2x8x128xf32> to vector<2x8xf32>
    %22 = vector.shape_cast %21 : vector<2x8xf32> to vector<2x8x1xf32>
    %23 = vector.broadcast %22 : vector<2x8x1xf32> to vector<2x8x128xf32>
    %24 = arith.divf %20, %23 : vector<2x8x128xf32>
    "tpu.trace_start"() <{level = 10 : i32, message = "bqk,bkd->bqd"}> : () -> ()
    %cst_13 = arith.constant dense<0.000000e+00> : vector<2x8x128xf32>
    %25 = tpu.matmul %24, %10, %cst_13 {dimension_numbers = #tpu.dot_dimension_numbers<[2], [1], [1], [2], [0, 0, 0, 1, 1, 2], [0], [0]>} : vector<2x8x128xf32>, vector<2x128x128xf32>, vector<2x8x128xf32> -> vector<2x8x128xf32>
    "tpu.trace_stop"() : () -> ()
    %26 = vector.extract_strided_slice %24 {offsets = [0, 0, 0], sizes = [2, 8, 4], strides = [1, 1, 1]} : vector<2x8x128xf32> to vector<2x8x4xf32>
    %c0_14 = arith.constant 0 : index
    %c0_15 = arith.constant 0 : index
    %c0_16 = arith.constant 0 : index
    %27 = vector.load %arg7[%c0_14, %c0_15, %c0_16] : memref<2x8x4xf32, #tpu.memory_space<vmem>>, vector<2x8x4xf32>
    tpu.vector_store %arg7[%c0_14, %c0_15, %c0_16], %26 {strides = array<i32>} : memref<2x8x4xf32, #tpu.memory_space<vmem>>, vector<2x8x4xf32>,
    %28 = vector.extract_strided_slice %25 {offsets = [0, 0, 0], sizes = [2, 8, 16], strides = [1, 1, 1]} : vector<2x8x128xf32> to vector<2x8x16xf32>
    %c0_17 = arith.constant 0 : index
    %c0_18 = arith.constant 0 : index
    %c0_19 = arith.constant 0 : index
    %29 = vector.load %arg8[%c0_17, %c0_18, %c0_19] : memref<2x8x16xf32, #tpu.memory_space<vmem>>, vector<2x8x16xf32>
    tpu.vector_store %arg8[%c0_17, %c0_18, %c0_19], %28 {strides = array<i32>} : memref<2x8x16xf32, #tpu.memory_space<vmem>>, vector<2x8x16xf32>,
    return
  }
  func.func @transform_0(%arg0: i32, %arg1: i32) -> (i32, i32, i32) {
    %c0_i32 = arith.constant 0 : i32
    %c0_i32_0 = arith.constant 0 : i32
    return %arg0, %arg1, %c0_i32 : i32, i32, i32
  }
  func.func @transform_1(%arg0: i32, %arg1: i32) -> (i32, i32, i32) {
    %c0_i32 = arith.constant 0 : i32
    %c0_i32_0 = arith.constant 0 : i32
    %c0_i32_1 = arith.constant 0 : i32
    return %arg0, %c0_i32, %c0_i32_0 : i32, i32, i32
  }
  func.func @transform_2(%arg0: i32, %arg1: i32) -> (i32, i32) {
    %c0_i32 = arith.constant 0 : i32
    %c0_i32_0 = arith.constant 0 : i32
    %c0_i32_1 = arith.constant 0 : i32
    return %c0_i32, %c0_i32_0 : i32, i32
  }
  func.func @transform_3(%arg0: i32, %arg1: i32) -> (i32, i32) {
    %c0_i32 = arith.constant 0 : i32
    %c0_i32_0 = arith.constant 0 : i32
    %c0_i32_1 = arith.constant 0 : i32
    return %c0_i32, %c0_i32_0 : i32, i32
  }
  func.func @transform_4(%arg0: i32, %arg1: i32) -> (i32, i32) {
    %c0_i32 = arith.constant 0 : i32
    %c0_i32_0 = arith.constant 0 : i32
    %c0_i32_1 = arith.constant 0 : i32
    return %c0_i32, %c0_i32_0 : i32, i32
  }
  func.func @transform_5(%arg0: i32, %arg1: i32) -> (i32, i32, i32) {
    %c0_i32 = arith.constant 0 : i32
    %c0_i32_0 = arith.constant 0 : i32
    return %arg0, %arg1, %c0_i32 : i32, i32, i32
  }
  func.func @transform_6(%arg0: i32, %arg1: i32) -> (i32, i32, i32) {
    %c0_i32 = arith.constant 0 : i32
    %c0_i32_0 = arith.constant 0 : i32
    return %arg0, %arg1, %c0_i32 : i32, i32, i32
  }
}

</mosaic_0001>

<bundles_post_ra>
// kernel: tpu_custom_call.1
= control target key start
LH: loop header
LB: loop body
LE: loop exit
PB: predicated region body
PF: predicated region fallthrough
CT: control target
= control target key end

     0   :  { %12 = vsyncpa [#allocation4], 0  ;;  %s1907_s0 = inlined_call_operand.hbm [shape: f32[2,8,128], index: 0, kind: input, shape index: {}]   ;;  %s1908_s1 = inlined_call_operand.hbm [shape: f32[2,128,128], index: 1, kind: input, shape index: {}]   ;;  %s1909_s2 = inlined_call_operand.hbm [shape: f32[128,128], index: 2, kind: input, shape index: {}]   ;;  %s1910_s3 = inlined_call_operand.hbm [shape: f32[128,256], index: 3, kind: input, shape index: {}]   ;;  %s1911_s4 = inlined_call_operand.hbm [shape: f32[1,128], index: 4, kind: input, shape index: {}]   ;;  %s1912_s5 = inlined_call_operand.hbm [shape: f32[2,8,4], index: 5, kind: output, shape index: {0}]   ;;  %s1913_s6 = inlined_call_operand.hbm [shape: f32[2,8,16], index: 6, kind: output, shape index: {1}]  }
   0x1   :  { %13 = vsyncpa [#allocation7], 0 }
   0x2   :  { %14 = vsyncpa [#allocation10], 0 }
   0x3   :  { %15 = vsyncpa [#allocation5], 0 }
   0x4   :  { %16 = vsyncpa [#allocation14], 0  ;;  %s1590_s21 = smov [#allocation6]   ;;  %s1591_s23 = smov [#allocation9]  }
   0x5   :  { %s34_s22 = sshll.u32 %s1590_s21, 4  ;;  %s58_s24 = sshll.u32 %s1591_s23, 4  ;;  %s35_s22 = int_to_ptr.vmem [resolvable:$true] %s34_s22  ;;  %s1639_s24 = int_to_ptr.vmem [resolvable:$true] %s58_s24 }
   0x6   :  { %s1426_s27 = scalar_lea.hbm %s1908_s1, 4096 }
   0x7   :  { %p1427_p0 = scmp.ne.s32.totalorder %s1908_s1, %s1426_s27  ;;  %p1430_p1 = scmp.lt.u32.totalorder %s1426_s27, %s1908_s1 }
   0x9   :  { %p1432_p2 = pnand %p1430_p1, %p1427_p0 }
   0xb   :  { %1435 = shalt.err (!%p1432_p2)
}
   0xc   :  { %s1436_s8 = scalar_lea.vmem %s35_s22, 4096  ;;  %p1441_p4 = scmp.lt.s32.totalorder %s35_s22, %s35_s22 }
   0xd   :  { %p1437_p3 = scmp.ne.s32.totalorder %s35_s22, %s1436_s8  ;;  %p1442_p5 = scmp.lt.s32.totalorder %s1436_s8, %s1436_s8 }
   0xf   :  { %p1443_p6 = por %p1442_p5, %p1441_p4 }
  0x11   :  { %p1444_p7 = pnand %p1443_p6, %p1437_p3 }
  0x13   :  { %1447 = shalt.err (!%p1444_p7)
}
  0x14   :  { %s1592_s9 = smov 128   ;;  %s1593_s10 = smov 8  }
  0x15   :  { %40 = dma.hbm_to_vmem [thread:$0]  %s1908_s1, 4096, %s35_s22, [#allocation7], %s1592_s9, %s1592_s9, %s1593_s10  }
  0x16   :  { %s1448_s15 = scalar_lea.hbm %s1910_s3, 4096 }
  0x17   :  { %p1449_p8 = scmp.ne.s32.totalorder %s1910_s3, %s1448_s15  ;;  %p1452_p9 = scmp.lt.u32.totalorder %s1448_s15, %s1910_s3 }
  0x19   :  { %p1454_p10 = pnand %p1452_p9, %p1449_p8 }
  0x1b   :  { %1457 = shalt.err (!%p1454_p10)
}
  0x1c   :  { %s1458_s20 = scalar_lea.vmem %s1639_s24, 4096  ;;  %p1463_p12 = scmp.lt.s32.totalorder %s1639_s24, %s1639_s24 }
  0x1d   :  { %p1459_p11 = scmp.ne.s32.totalorder %s1639_s24, %s1458_s20  ;;  %p1464_p13 = scmp.lt.s32.totalorder %s1458_s20, %s1458_s20 }
  0x1f   :  { %p1465_p0 = por %p1464_p13, %p1463_p12 }
  0x21   :  { %p1466_p1 = pnand %p1465_p0, %p1459_p11 }
  0x23   :  { %1469 = shalt.err (!%p1466_p1)
}
  0x24   :  { %s1594_s1 = smov 256   ;;  %s1595_s21 = smov 16  }
  0x25   :  { %64 = dma.hbm_to_vmem [thread:$0]  %s1910_s3, 4096, %s1639_s24, [#allocation10], %s1594_s1, %s1594_s1, %s1595_s21  }
  0x26   :  { %s1596_s25 = smov [#allocation3]   ;;  %s1597_s27 = smov [#allocation8]  }
  0x27   :  { %s22_s26 = sshll.u32 %s1596_s25, 4  ;;  %s46_s28 = sshll.u32 %s1597_s27, 4  ;;  %s23_s26 = int_to_ptr.vmem [resolvable:$true] %s22_s26  ;;  %s1673_s28 = int_to_ptr.vmem [resolvable:$true] %s46_s28 }
  0x28   :  { %s1470_s7 = scalar_lea.hbm %s1907_s0, 256 }
  0x29   :  { %p1471_p2 = scmp.ne.s32.totalorder %s1907_s0, %s1470_s7  ;;  %p1474_p3 = scmp.lt.u32.totalorder %s1470_s7, %s1907_s0 }
  0x2b   :  { %p1476_p4 = pnand %p1474_p3, %p1471_p2 }
  0x2d   :  { %1479 = shalt.err (!%p1476_p4)
}
  0x2e   :  { %s1480_s3 = scalar_lea.vmem %s23_s26, 256  ;;  %p1485_p6 = scmp.lt.s32.totalorder %s23_s26, %s23_s26 }
  0x2f   :  { %p1481_p5 = scmp.ne.s32.totalorder %s23_s26, %s1480_s3  ;;  %p1486_p7 = scmp.lt.s32.totalorder %s1480_s3, %s1480_s3 }
  0x31   :  { %p1487_p8 = por %p1486_p7, %p1485_p6 }
  0x33   :  { %p1488_p9 = pnand %p1487_p8, %p1481_p5 }
  0x35   :  { %1491 = shalt.err (!%p1488_p9)
}
  0x36   :  { %28 = dma.hbm_to_vmem [thread:$0]  %s1907_s0, 256, %s23_s26, [#allocation4], %s1592_s9, %s1592_s9, %s1593_s10  }
  0x37   :  { %s1492_s17 = scalar_lea.hbm %s1909_s2, 2048 }
  0x38   :  { %p1493_p10 = scmp.ne.s32.totalorder %s1909_s2, %s1492_s17  ;;  %p1496_p11 = scmp.lt.u32.totalorder %s1492_s17, %s1909_s2 }
  0x3a   :  { %p1498_p12 = pnand %p1496_p11, %p1493_p10 }
  0x3c   :  { %1501 = shalt.err (!%p1498_p12)
}
  0x3d   :  { %s1502_s21 = scalar_lea.vmem %s1673_s28, 2048  ;;  %p1507_p0 = scmp.lt.s32.totalorder %s1673_s28, %s1673_s28 }
  0x3e   :  { %p1503_p13 = scmp.ne.s32.totalorder %s1673_s28, %s1502_s21  ;;  %p1508_p1 = scmp.lt.s32.totalorder %s1502_s21, %s1502_s21 }
  0x40   :  { %p1509_p2 = por %p1508_p1, %p1507_p0 }
  0x42   :  { %p1510_p3 = pnand %p1509_p2, %p1503_p13 }
  0x44   :  { %1513 = shalt.err (!%p1510_p3)
}
  0x45   :  { %52 = dma.hbm_to_vmem [thread:$0]  %s1909_s2, 2048, %s1673_s28, [#allocation7], %s1592_s9, %s1592_s9, %s1593_s10  }
  0x46   :  { %s1598_s23 = smov [#allocation11]   ;;  %s1514_s29 = scalar_lea.hbm %s1911_s4, 16 }
  0x47   :  { %s71_s25 = sshll.u32 %s1598_s23, 4  ;;  %p1515_p4 = scmp.ne.s32.totalorder %s1911_s4, %s1514_s29  ;;  %s72_s25 = int_to_ptr.vmem [resolvable:$true] %s71_s25 }
  0x48   :  { %p1518_p5 = scmp.lt.u32.totalorder %s1514_s29, %s1911_s4 }
  0x4a   :  { %p1520_p6 = pnand %p1518_p5, %p1515_p4 }
  0x4c   :  { %1523 = shalt.err (!%p1520_p6)
}
  0x4d   :  { %s1524_s12 = scalar_lea.vmem %s72_s25, 16  ;;  %s1528_s2 = scalar_lea.vmem %s72_s25, 32 }
  0x4e   :  { %p1525_p7 = scmp.ne.s32.totalorder %s72_s25, %s1524_s12  ;;  %p1529_p8 = scmp.lt.s32.totalorder %s72_s25, %s72_s25 }
  0x4f   :  { %p1530_p9 = scmp.lt.s32.totalorder %s1528_s2, %s1524_s12 }
  0x51   :  { %p1531_p10 = por %p1530_p9, %p1529_p8 }
  0x53   :  { %p1532_p11 = pnand %p1531_p10, %p1525_p7 }
  0x55   :  { %1535 = shalt.err (!%p1532_p11)
}
  0x56   :  { %74 = dma.hbm_to_vmem [thread:$0]  %s1911_s4, 16, %s72_s25, [#allocation10]  }
  0x57   :  { %1580 = dma.done.wait [#allocation4], 256  }
  0x58   :  { %1581 = vsyncadd [#allocation4], 4294967040 }
  0x59   :  { %1582 = dma.done.wait [#allocation7], 6144  }
  0x5a   :  { %1583 = vsyncadd [#allocation7], 4294961152 }
  0x5b   :  { %1584 = dma.done.wait [#allocation10], 4112  }
  0x5c   :  { %1585 = vsyncadd [#allocation10], 4294963184  ;;  %v1599_v0 = vmov 0.0   ;;  %v127_v1 = vld [vmem:[#allocation9 + $0x8] sm:$0xff]  ;;  %v129_v2 = vld [vmem:[#allocation9 + $0x18] sm:$0xff]  ;;  %vm1601_vm0 = vmmov 0  }
  0x5d   :  { %222 = vmatprep.mubr.f32.mxu0 %v1599_v0  ;;  %v126_v3 = vld [vmem:[#allocation9] sm:$0xff]  ;;  %v1244_v4 = vpack.c.bf16 %v129_v2, %v127_v1  ;;  %v128_v5 = vld [vmem:[#allocation9 + $0x10] sm:$0xff]  ;;  %v131_v6 = vld [vmem:[#allocation9 + $0x28] sm:$0xff]  ;;  %vm941_vm1 = vcmask 31744   ;;  %s1602_s4 = smov [#allocation12]  }
  0x5e   :  { %v133_v7 = vld [vmem:[#allocation9 + $0x38] sm:$0xff]  ;;  %v1246_v8 = vpack.c.bf16 %v128_v5, %v126_v3  ;;  %v130_v10 = vld [vmem:[#allocation9 + $0x20] sm:$0xff]  ;;  %v132_v11 = vld [vmem:[#allocation9 + $0x30] sm:$0xff]  ;;  %s952_s3 = sshll.u32 %s1602_s4, 4  ;;  %s953_s3 = int_to_ptr.vmem [resolvable:$true] %s952_s3 }
  0x5f   :  { %v1248_v9 = vpack.c.bf16 %v133_v7, %v131_v6  ;;  %v135_v12 = vld [vmem:[#allocation9 + $0x48] sm:$0xff]  ;;  %1245 = vmatprep.subr.bf16.mxu0 %v1244_v4  ;;  %v137_v13 = vld [vmem:[#allocation9 + $0x58] sm:$0xff]  ;;  %v1250_v14 = vpack.c.bf16 %v132_v11, %v130_v10  ;;  %v134_v16 = vld [vmem:[#allocation9 + $0x40] sm:$0xff]  ;;  %s1536_s24 = scalar_lea.vmem %s953_s3, 256  ;;  %p1541_p13 = scmp.lt.s32.totalorder %s953_s3, %s953_s3 }
  0x60   :  { %1247 = vmatpush1.bf16.msra.mxu0 %v1246_v8  ;;  %v1252_v15 = vpack.c.bf16 %v137_v13, %v135_v12  ;;  %v136_v17 = vld [vmem:[#allocation9 + $0x50] sm:$0xff]  ;;  %v139_v18 = vld [vmem:[#allocation9 + $0x68] sm:$0xff]  ;;  %v141_v19 = vld [vmem:[#allocation9 + $0x78] sm:$0xff]  ;;  %p1537_p12 = scmp.ne.s32.totalorder %s953_s3, %s1536_s24  ;;  %p1542_p0 = scmp.lt.s32.totalorder %s1536_s24, %s1536_s24 }
  0x61   :  { %1249 = vmatprep.subr.bf16.mxu0 %v1248_v9  ;;  %v1254_v20 = vpack.c.bf16 %v136_v17, %v134_v16  ;;  %v1256_v21 = vpack.c.bf16 %v141_v19, %v139_v18  ;;  %v138_v22 = vld [vmem:[#allocation9 + $0x60] sm:$0xff]  ;;  %v140_v23 = vld [vmem:[#allocation9 + $0x70] sm:$0xff]  ;;  %v143_v24 = vld [vmem:[#allocation9 + $0x88] sm:$0xff] }
  0x62   :  { %v145_v25 = vld [vmem:[#allocation9 + $0x98] sm:$0xff]  ;;  %v1258_v26 = vpack.c.bf16 %v140_v23, %v138_v22  ;;  %v142_v28 = vld [vmem:[#allocation9 + $0x80] sm:$0xff]  ;;  %v144_v29 = vld [vmem:[#allocation9 + $0x90] sm:$0xff]  ;;  %p1543_p1 = por %p1542_p0, %p1541_p13 }
  0x63   :  { %v1260_v27 = vpack.c.bf16 %v145_v25, %v143_v24  ;;  %v147_v30 = vld [vmem:[#allocation9 + $0xa8] sm:$0xff]  ;;  %v149_v31 = vld [vmem:[#allocation9 + $0xb8] sm:$0xff]  ;;  %v481_v32 = vld [vmem:[#allocation8] sm:$0xff]  ;;  %v1262_v37 = vpack.c.bf16 %v144_v29, %v142_v28 }
  0x64   :  { %1251 = vmatpush1.bf16.msra.mxu0 %v1250_v14  ;;  %v482_v33 = vld [vmem:[#allocation8 + $0x8] sm:$0xff]  ;;  %v483_v35 = vld [vmem:[#allocation8 + $0x10] sm:$0xff]  ;;  %v484_v36 = vld [vmem:[#allocation8 + $0x18] sm:$0xff]  ;;  %v1264_v41 = vpack.c.bf16 %v149_v31, %v147_v30  ;;  %p1544_p2 = pnand %p1543_p1, %p1537_p12 }
  0x65   :  { %1253 = vmatprep.subr.bf16.mxu0 %v1252_v15  ;;  %v1276_v34 = vpack.c.bf16 %v482_v33, %v481_v32  ;;  %v1280_v38 = vpack.c.bf16 %v484_v36, %v483_v35  ;;  %v485_v39 = vld [vmem:[#allocation8 + $0x20] sm:$0xff]  ;;  %v486_v40 = vld [vmem:[#allocation8 + $0x28] sm:$0xff]  ;;  %v148_v43 = vld [vmem:[#allocation9 + $0xb0] sm:$0xff]  ;;  %v1600_v36 = vmov 0.0|0.0  }
  0x66   :  { %v146_v42 = vld [vmem:[#allocation9 + $0xa0] sm:$0xff]  ;;  %v151_v44 = vld [vmem:[#allocation9 + $0xc8] sm:$0xff]  ;;  %v153_v45 = vld [vmem:[#allocation9 + $0xd8] sm:$0xff]  ;;  %v1284_v46 = vpack.c.bf16 %v486_v40, %v485_v39 }
  0x67   :  { %1277 = vmatprep.subr.bf16.mxu1 %v1276_v34  ;;  %v1266_v47 = vpack.c.bf16 %v148_v43, %v146_v42  ;;  %v487_v48 = vld [vmem:[#allocation8 + $0x30] sm:$0xff]  ;;  %v488_v49 = vld [vmem:[#allocation8 + $0x38] sm:$0xff]  ;;  %v1268_v50 = vpack.c.bf16 %v153_v45, %v151_v44  ;;  %v150_v51 = vld [vmem:[#allocation9 + $0xc0] sm:$0xff] }
  0x68   :  { %1255 = vmatpush1.bf16.msra.mxu0 %v1254_v20  ;;  %1279 = vmatpush3.bf16.msra.mxu1 %v1276_v34  ;;  %v152_v52 = vld [vmem:[#allocation9 + $0xd0] sm:$0xff]  ;;  %v155_v54 = vld [vmem:[#allocation9 + $0xe8] sm:$0xff]  ;;  %v157_v55 = vld [vmem:[#allocation9 + $0xf8] sm:$0xff]  ;;  %v1288_v56 = vpack.c.bf16 %v488_v49, %v487_v48 }
  0x69   :  { %1257 = vmatprep.subr.bf16.mxu0 %v1256_v21  ;;  %1281 = vmatprep.subr.bf16.mxu1 %v1280_v38  ;;  %v479_v53 = vld [vmem:[#allocation3] sm:$0xff]  ;;  %v1270_v57 = vpack.c.bf16 %v152_v52, %v150_v51  ;;  %v489_v58 = vld [vmem:[#allocation8 + $0x40] sm:$0xff]  ;;  %v490_v59 = vld [vmem:[#allocation8 + $0x48] sm:$0xff]  ;;  %v1272_v60 = vpack.c.bf16 %v157_v55, %v155_v54 }
  0x6a   :  { %1101 = vmatprep.mubr.f32.mxu1 %v479_v53  ;;  %v154_v61 = vld [vmem:[#allocation9 + $0xe0] sm:$0xff]  ;;  %v156_v62 = vld [vmem:[#allocation9 + $0xf0] sm:$0xff]  ;;  %v1292_v63 = vpack.c.bf16 %v490_v59, %v489_v58  ;;  %v492_v3 = vld [vmem:[#allocation8 + $0x58] sm:$0xff] }
  0x6b   :  { %v1274_v1 = vpack.c.bf16 %v156_v62, %v154_v61  ;;  %v491_v2 = vld [vmem:[#allocation8 + $0x50] sm:$0xff]  ;;  %v94_v5 = vld [vmem:[#allocation6] sm:$0xff]  ;;  %v494_v7 = vld [vmem:[#allocation8 + $0x68] sm:$0xff] }
  0x6c   :  { %1259 = vmatpush1.bf16.msra.mxu0 %v1258_v26  ;;  %1283 = vmatpush3.bf16.msra.mxu1 %v1280_v38  ;;  %v1296_v4 = vpack.c.bf16 %v492_v3, %v491_v2  ;;  %v493_v6 = vld [vmem:[#allocation8 + $0x60] sm:$0xff]  ;;  %v95_v9 = vld [vmem:[#allocation6 + $0x8] sm:$0xff]  ;;  %v495_v10 = vld [vmem:[#allocation8 + $0x70] sm:$0xff] }
  0x6d   :  { %1261 = vmatprep.subr.bf16.mxu0 %v1260_v27  ;;  %1285 = vmatprep.subr.bf16.mxu1 %v1284_v46  ;;  %v1300_v8 = vpack.c.bf16 %v494_v7, %v493_v6  ;;  %v496_v11 = vld [vmem:[#allocation8 + $0x78] sm:$0xff]  ;;  %v96_v13 = vld [vmem:[#allocation6 + $0x10] sm:$0xff]  ;;  %v98_v16 = vld [vmem:[#allocation6 + $0x20] sm:$0xff] }
  0x6e   :  { %v1304_v12 = vpack.c.bf16 %v496_v11, %v495_v10  ;;  %v97_v14 = vld [vmem:[#allocation6 + $0x18] sm:$0xff]  ;;  %v99_v17 = vld [vmem:[#allocation6 + $0x28] sm:$0xff]  ;;  %v100_v18 = vld [vmem:[#allocation6 + $0x30] sm:$0xff] }
  0x6f   :  { %v480_v15 = vld [vmem:[#allocation3 + $0x8] sm:$0xff]  ;;  %v102_v20 = vld [vmem:[#allocation6 + $0x40] sm:$0xff]  ;;  %v103_v21 = vld [vmem:[#allocation6 + $0x48] sm:$0xff] }
  0x70   :  { %1263 = vmatpush1.bf16.msra.mxu0 %v1262_v37  ;;  %1287 = vmatpush3.bf16.msra.mxu1 %v1284_v46  ;;  %v101_v19 = vld [vmem:[#allocation6 + $0x38] sm:$0xff]  ;;  %v104_v22 = vld [vmem:[#allocation6 + $0x50] sm:$0xff]  ;;  %v106_v24 = vld [vmem:[#allocation6 + $0x60] sm:$0xff] }
  0x71   :  { %1265 = vmatprep.subr.bf16.mxu0 %v1264_v41  ;;  %1289 = vmatprep.subr.bf16.mxu1 %v1288_v56  ;;  %v105_v23 = vld [vmem:[#allocation6 + $0x58] sm:$0xff]  ;;  %v107_v25 = vld [vmem:[#allocation6 + $0x68] sm:$0xff]  ;;  %v108_v26 = vld [vmem:[#allocation6 + $0x70] sm:$0xff] }
  0x72   :  { %v109_v27 = vld [vmem:[#allocation6 + $0x78] sm:$0xff]  ;;  %v110_v28 = vld [vmem:[#allocation6 + $0x80] sm:$0xff]  ;;  %v111_v29 = vld [vmem:[#allocation6 + $0x88] sm:$0xff] }
  0x73   :  { %v112_v30 = vld [vmem:[#allocation6 + $0x90] sm:$0xff]  ;;  %v113_v31 = vld [vmem:[#allocation6 + $0x98] sm:$0xff]  ;;  %v114_v32 = vld [vmem:[#allocation6 + $0xa0] sm:$0xff] }
  0x74   :  { %1267 = vmatpush1.bf16.msra.mxu0 %v1266_v47  ;;  %1291 = vmatpush3.bf16.msra.mxu1 %v1288_v56  ;;  %v115_v33 = vld [vmem:[#allocation6 + $0xa8] sm:$0xff]  ;;  %v116_v34 = vld [vmem:[#allocation6 + $0xb0] sm:$0xff]  ;;  %v117_v35 = vld [vmem:[#allocation6 + $0xb8] sm:$0xff] }
  0x75   :  { %1269 = vmatprep.subr.bf16.mxu0 %v1268_v50  ;;  %1293 = vmatprep.subr.bf16.mxu1 %v1292_v63  ;;  %v118_v37 = vld [vmem:[#allocation6 + $0xc0] sm:$0xff]  ;;  %v119_v38 = vld [vmem:[#allocation6 + $0xc8] sm:$0xff]  ;;  %v120_v39 = vld [vmem:[#allocation6 + $0xd0] sm:$0xff] }
  0x76   :  { %v121_v40 = vld [vmem:[#allocation6 + $0xd8] sm:$0xff]  ;;  %v122_v41 = vld [vmem:[#allocation6 + $0xe0] sm:$0xff]  ;;  %v123_v42 = vld [vmem:[#allocation6 + $0xe8] sm:$0xff] }
  0x77   :  { %v124_v43 = vld [vmem:[#allocation6 + $0xf0] sm:$0xff]  ;;  %v125_v44 = vld [vmem:[#allocation6 + $0xf8] sm:$0xff] }
  0x78   :  { %1271 = vmatpush1.bf16.msra.mxu0 %v1270_v57  ;;  %1295 = vmatpush3.bf16.msra.mxu1 %v1292_v63 }
  0x79   :  { %1273 = vmatprep.subr.bf16.mxu0 %v1272_v60  ;;  %1297 = vmatprep.subr.bf16.mxu1 %v1296_v4 }
  0x7c   :  { %1275 = vmatpush1.bf16.msra.mxu0 %v1274_v1  ;;  %1299 = vmatpush3.bf16.msra.mxu1 %v1296_v4 }
  0x7d   :  { %1301 = vmatprep.subr.bf16.mxu1 %v1300_v8  ;;  %1332 = vmatprep.subr.bf16.mxu0 %v1600_v36 }
  0x7f   :  { %223 = vmatmul.mubr.f32.vlgmr.msra.gmra.mrb[0].mxu0 %v94_v5 }
  0x80   :  { %228 = vmatprep.mubr.f32.mxu0 %v1599_v0  ;;  %1303 = vmatpush3.bf16.msra.mxu1 %v1300_v8 }
  0x81   :  { %1305 = vmatprep.subr.bf16.mxu1 %v1304_v12 }
  0x83   :  { %229 = vmatmul.mubr.f32.gmra.mrb[2].mxu0 %v95_v9 }
  0x84   :  { %234 = vmatprep.mubr.f32.mxu0 %v1599_v0  ;;  %1307 = vmatpush3.bf16.msra.mxu1 %v1304_v12 }
  0x85   :  { %1308 = vmatprep.subr.bf16.mxu1 %v1600_v36 }
  0x87   :  { %235 = vmatmul.mubr.f32.gmra.mrb[4].mxu0 %v96_v13  ;;  %1102 = vmatmul.mubr.f32.vlgmr.msra.gmra.mrb[0].mxu1 %v480_v15 }
  0x88   :  { %240 = vmatprep.mubr.f32.mxu0 %v1599_v0  ;;  %1136 = vmatprep.mubr.msk.f32.mxu1 %vm1601_vm0, %v1599_v0 }
  0x8b   :  { %241 = vmatmul.mubr.f32.gmra.mrb[6].mxu0 %v97_v14 }
  0x8c   :  { %246 = vmatprep.mubr.f32.mxu0 %v1599_v0 }
  0x8f   :  { %247 = vmatmul.mubr.f32.gmra.mrb[8].mxu0 %v98_v16 }
  0x90   :  { %252 = vmatprep.mubr.f32.mxu0 %v1599_v0 }
  0x93   :  { %253 = vmatmul.mubr.f32.gmra.mrb[10].mxu0 %v99_v17 }
  0x94   :  { %258 = vmatprep.mubr.f32.mxu0 %v1599_v0 }
  0x97   :  { %259 = vmatmul.mubr.f32.gmra.mrb[12].mxu0 %v100_v18 }
  0x98   :  { %264 = vmatprep.mubr.f32.mxu0 %v1599_v0 }
  0x9b   :  { %265 = vmatmul.mubr.f32.gmra.mrb[14].mxu0 %v101_v19 }
  0x9c   :  { %270 = vmatprep.mubr.f32.mxu0 %v1599_v0 }
  0x9f   :  { %271 = vmatmul.mubr.f32.gmra.mrb[16].mxu0 %v102_v20 }
  0xa0   :  { %276 = vmatprep.mubr.f32.mxu0 %v1599_v0 }
  0xa3   :  { %277 = vmatmul.mubr.f32.gmra.mrb[18].mxu0 %v103_v21 }
  0xa4   :  { %282 = vmatprep.mubr.f32.mxu0 %v1599_v0 }
  0xa7   :  { %283 = vmatmul.mubr.f32.gmra.mrb[20].mxu0 %v104_v22 }
  0xa8   :  { %288 = vmatprep.mubr.f32.mxu0 %v1599_v0 }
  0xab   :  { %289 = vmatmul.mubr.f32.gmra.mrb[22].mxu0 %v105_v23 }
  0xac   :  { %294 = vmatprep.mubr.f32.mxu0 %v1599_v0 }
  0xaf   :  { %295 = vmatmul.mubr.f32.gmra.mrb[24].mxu0 %v106_v24 }
  0xb0   :  { %300 = vmatprep.mubr.f32.mxu0 %v1599_v0 }
  0xb3   :  { %301 = vmatmul.mubr.f32.gmra.mrb[26].mxu0 %v107_v25 }
  0xb4   :  { %306 = vmatprep.mubr.f32.mxu0 %v1599_v0 }
  0xb7   :  { %307 = vmatmul.mubr.f32.gmra.mrb[28].mxu0 %v108_v26 }
  0xb8   :  { %312 = vmatprep.mubr.f32.mxu0 %v1599_v0 }
  0xbb   :  { %313 = vmatmul.mubr.f32.gmra.mrb[30].mxu0 %v109_v27 }
  0xbc   :  { %318 = vmatprep.mubr.f32.mxu0 %v1599_v0 }
  0xbf   :  { %319 = vmatmul.mubr.f32.gmra.mrb[32].mxu0 %v110_v28 }
  0xc0   :  { %324 = vmatprep.mubr.f32.mxu0 %v1599_v0 }
  0xc3   :  { %325 = vmatmul.mubr.f32.gmra.mrb[34].mxu0 %v111_v29 }
  0xc4   :  { %330 = vmatprep.mubr.f32.mxu0 %v1599_v0 }
  0xc7   :  { %331 = vmatmul.mubr.f32.gmra.mrb[36].mxu0 %v112_v30 }
  0xc8   :  { %336 = vmatprep.mubr.f32.mxu0 %v1599_v0 }
  0xcb   :  { %337 = vmatmul.mubr.f32.gmra.mrb[38].mxu0 %v113_v31 }
  0xcc   :  { %342 = vmatprep.mubr.f32.mxu0 %v1599_v0 }
  0xcf   :  { %343 = vmatmul.mubr.f32.gmra.mrb[40].mxu0 %v114_v32 }
  0xd0   :  { %348 = vmatprep.mubr.f32.mxu0 %v1599_v0 }
  0xd3   :  { %349 = vmatmul.mubr.f32.gmra.mrb[42].mxu0 %v115_v33 }
  0xd4   :  { %354 = vmatprep.mubr.f32.mxu0 %v1599_v0 }
  0xd7   :  { %355 = vmatmul.mubr.f32.gmra.mrb[44].mxu0 %v116_v34 }
  0xd8   :  { %360 = vmatprep.mubr.f32.mxu0 %v1599_v0 }
  0xdb   :  { %361 = vmatmul.mubr.f32.gmra.mrb[46].mxu0 %v117_v35 }
  0xdc   :  { %366 = vmatprep.mubr.f32.mxu0 %v1599_v0 }
  0xdf   :  { %367 = vmatmul.mubr.f32.gmra.mrb[48].mxu0 %v118_v37 }
  0xe0   :  { %372 = vmatprep.mubr.f32.mxu0 %v1599_v0 }
  0xe3   :  { %373 = vmatmul.mubr.f32.gmra.mrb[50].mxu0 %v119_v38 }
  0xe4   :  { %378 = vmatprep.mubr.f32.mxu0 %v1599_v0 }
  0xe7   :  { %379 = vmatmul.mubr.f32.gmra.mrb[52].mxu0 %v120_v39 }
  0xe8   :  { %384 = vmatprep.mubr.f32.mxu0 %v1599_v0 }
  0xeb   :  { %385 = vmatmul.mubr.f32.gmra.mrb[54].mxu0 %v121_v40 }
  0xec   :  { %390 = vmatprep.mubr.f32.mxu0 %v1599_v0 }
  0xef   :  { %391 = vmatmul.mubr.f32.gmra.mrb[56].mxu0 %v122_v41 }
  0xf0   :  { %396 = vmatprep.mubr.f32.mxu0 %v1599_v0 }
  0xf3   :  { %397 = vmatmul.mubr.f32.gmra.mrb[58].mxu0 %v123_v42 }
  0xf4   :  { %402 = vmatprep.mubr.f32.mxu0 %v1599_v0 }
  0xf7   :  { %403 = vmatmul.mubr.f32.gmra.mrb[60].mxu0 %v124_v43 }
  0xf8   :  { %408 = vmatprep.mubr.f32.mxu0 %v1599_v0 }
  0xfb   :  { %409 = vmatmul.mubr.f32.gmra.mrb[62].mxu0 %v125_v44 }
  0xfc   :  { %1171 = vmatprep.mubr.msk.f32.mxu0 %vm1601_vm0, %v1599_v0 }
 0x152   :  { %v224_v45 = vpop.f32.mrb[0].mxu0 }
 0x153   :  { %v1760_v46 = vpop.f32.mrb[1].mxu0 }
 0x156   :  { %v230_v47 = vpop.f32.mrb[2].mxu0 }
 0x157   :  { %v1309_v48 = vpack.c.bf16 %v230_v47, %v224_v45  ;;  %v1762_v49 = vpop.f32.mrb[3].mxu0 }
 0x158   :  { %v1357_v50 = vpack.c.bf16 %v1762_v49, %v1760_v46 }
 0x159   :  { %1310 = vmatpush3.bf16.xpose.msra.mxu1 %v1309_v48 }
 0x15a   :  { %v236_v51 = vpop.f32.mrb[4].mxu0  ;;  %1311 = vmatprep.subr.bf16.mxu1 %v1600_v36  ;;  %v1773_v57 = vpop.f32.mrb[0].mxu1 }
 0x15b   :  { %v1767_v52 = vpop.f32.mrb[5].mxu0  ;;  %v563_v58 = vpop.f32.mrb[1].mxu1 }
 0x15e   :  { %v242_v53 = vpop.f32.mrb[6].mxu0 }
 0x15f   :  { %v1312_v54 = vpack.c.bf16 %v242_v53, %v236_v51  ;;  %v1769_v55 = vpop.f32.mrb[7].mxu0 }
 0x160   :  { %v1360_v56 = vpack.c.bf16 %v1769_v55, %v1767_v52 }
 0x161   :  { %1313 = vmatpush3.bf16.xpose.msra.mxu1 %v1312_v54 }
 0x162   :  { %v248_v59 = vpop.f32.mrb[8].mxu0  ;;  %1314 = vmatprep.subr.bf16.mxu1 %v1600_v36 }
 0x163   :  { %v1776_v60 = vpop.f32.mrb[9].mxu0 }
 0x166   :  { %v254_v61 = vpop.f32.mrb[10].mxu0 }
 0x167   :  { %v1315_v62 = vpack.c.bf16 %v254_v61, %v248_v59  ;;  %v1778_v63 = vpop.f32.mrb[11].mxu0 }
 0x168   :  { %v1363_v1 = vpack.c.bf16 %v1778_v63, %v1776_v60 }
 0x169   :  { %1316 = vmatpush3.bf16.xpose.msra.mxu1 %v1315_v62 }
 0x16a   :  { %v260_v2 = vpop.f32.mrb[12].mxu0  ;;  %1317 = vmatprep.subr.bf16.mxu1 %v1600_v36 }
 0x16b   :  { %v1783_v3 = vpop.f32.mrb[13].mxu0 }
 0x16e   :  { %v266_v4 = vpop.f32.mrb[14].mxu0 }
 0x16f   :  { %v1318_v5 = vpack.c.bf16 %v266_v4, %v260_v2  ;;  %v268_v6 = vpop.f32.mrb[15].mxu0 }
 0x170   :  { %v1366_v7 = vpack.c.bf16 %v268_v6, %v1783_v3 }
 0x171   :  { %1319 = vmatpush3.bf16.xpose.msra.mxu1 %v1318_v5 }
 0x172   :  { %v272_v8 = vpop.f32.mrb[16].mxu0  ;;  %1320 = vmatprep.subr.bf16.mxu1 %v1600_v36 }
 0x173   :  { %v1787_v9 = vpop.f32.mrb[17].mxu0 }
 0x176   :  { %v278_v10 = vpop.f32.mrb[18].mxu0 }
 0x177   :  { %v1321_v11 = vpack.c.bf16 %v278_v10, %v272_v8  ;;  %v280_v12 = vpop.f32.mrb[19].mxu0 }
 0x178   :  { %v1369_v13 = vpack.c.bf16 %v280_v12, %v1787_v9 }
 0x179   :  { %1322 = vmatpush3.bf16.xpose.msra.mxu1 %v1321_v11 }
 0x17a   :  { %v284_v14 = vpop.f32.mrb[20].mxu0  ;;  %1323 = vmatprep.subr.bf16.mxu1 %v1600_v36 }
 0x17b   :  { %v286_v15 = vpop.f32.mrb[21].mxu0 }
 0x17e   :  { %v290_v16 = vpop.f32.mrb[22].mxu0 }
 0x17f   :  { %v1324_v17 = vpack.c.bf16 %v290_v16, %v284_v14  ;;  %v292_v18 = vpop.f32.mrb[23].mxu0 }
 0x180   :  { %v1372_v19 = vpack.c.bf16 %v292_v18, %v286_v15 }
 0x181   :  { %1325 = vmatpush3.bf16.xpose.msra.mxu1 %v1324_v17 }
 0x182   :  { %v296_v20 = vpop.f32.mrb[24].mxu0  ;;  %1326 = vmatprep.subr.bf16.mxu1 %v1600_v36 }
 0x183   :  { %v298_v21 = vpop.f32.mrb[25].mxu0 }
 0x186   :  { %v302_v22 = vpop.f32.mrb[26].mxu0 }
 0x187   :  { %v1327_v23 = vpack.c.bf16 %v302_v22, %v296_v20  ;;  %v304_v24 = vpop.f32.mrb[27].mxu0 }
 0x188   :  { %v1375_v25 = vpack.c.bf16 %v304_v24, %v298_v21 }
 0x189   :  { %1328 = vmatpush3.bf16.xpose.msra.mxu1 %v1327_v23 }
 0x18a   :  { %v308_v26 = vpop.f32.mrb[28].mxu0  ;;  %1329 = vmatprep.subr.bf16.mxu1 %v1600_v36 }
 0x18b   :  { %v310_v27 = vpop.f32.mrb[29].mxu0 }
 0x18e   :  { %v314_v28 = vpop.f32.mrb[30].mxu0 }
 0x18f   :  { %v1330_v29 = vpack.c.bf16 %v314_v28, %v308_v26  ;;  %v316_v30 = vpop.f32.mrb[31].mxu0 }
 0x190   :  { %v1378_v31 = vpack.c.bf16 %v316_v30, %v310_v27 }
 0x191   :  { %1331 = vmatpush3.bf16.xpose.msra.mxu1 %v1330_v29 }
 0x192   :  { %v320_v32 = vpop.f32.mrb[32].mxu0  ;;  %1356 = vmatprep.subr.bf16.mxu1 %v1600_v36 }
 0x193   :  { %v1794_v33 = vpop.f32.mrb[33].mxu0 }
 0x196   :  { %v326_v34 = vpop.f32.mrb[34].mxu0 }
 0x197   :  { %v1333_v35 = vpack.c.bf16 %v326_v34, %v320_v32  ;;  %v1796_v37 = vpop.f32.mrb[35].mxu0 }
 0x198   :  { %v1381_v38 = vpack.c.bf16 %v1796_v37, %v1794_v33  ;;  %1137 = vmatmul.mubr.f32.vlgmr.msra.gmra.mrb[2].mxu1 %v563_v58 }
 0x199   :  { %1334 = vmatpush3.bf16.xpose.msra.mxu0 %v1333_v35  ;;  %1358 = vmatpush3.bf16.msra.mxu1 %v1357_v50 }
 0x19a   :  { %v332_v39 = vpop.f32.mrb[36].mxu0  ;;  %1359 = vmatprep.subr.bf16.mxu1 %v1600_v36  ;;  %1335 = vmatprep.subr.bf16.mxu0 %v1600_v36 }
 0x19b   :  { %v1805_v40 = vpop.f32.mrb[37].mxu0  ;;  %1206 = vmatprep.mubr.msk.f32.mxu1 %vm1601_vm0, %v1599_v0 }
 0x19d   :  { %1361 = vmatpush3.bf16.msra.mxu1 %v1360_v56 }
 0x19e   :  { %v338_v41 = vpop.f32.mrb[38].mxu0  ;;  %1362 = vmatprep.subr.bf16.mxu1 %v1600_v36 }
 0x19f   :  { %v1336_v42 = vpack.c.bf16 %v338_v41, %v332_v39  ;;  %v1813_v43 = vpop.f32.mrb[39].mxu0 }
 0x1a0   :  { %v1384_v44 = vpack.c.bf16 %v1813_v43, %v1805_v40 }
 0x1a1   :  { %1337 = vmatpush3.bf16.xpose.msra.mxu0 %v1336_v42  ;;  %1364 = vmatpush3.bf16.msra.mxu1 %v1363_v1 }
 0x1a2   :  { %v344_v45 = vpop.f32.mrb[40].mxu0  ;;  %1365 = vmatprep.subr.bf16.mxu1 %v1600_v36  ;;  %1338 = vmatprep.subr.bf16.mxu0 %v1600_v36 }
 0x1a3   :  { %v1822_v46 = vpop.f32.mrb[41].mxu0 }
 0x1a5   :  { %1367 = vmatpush3.bf16.msra.mxu1 %v1366_v7 }
 0x1a6   :  { %v350_v47 = vpop.f32.mrb[42].mxu0  ;;  %1368 = vmatprep.subr.bf16.mxu1 %v1600_v36 }
 0x1a7   :  { %v1339_v48 = vpack.c.bf16 %v350_v47, %v344_v45  ;;  %v1825_v49 = vpop.f32.mrb[43].mxu0 }
 0x1a8   :  { %v1387_v50 = vpack.c.bf16 %v1825_v49, %v1822_v46 }
 0x1a9   :  { %1340 = vmatpush3.bf16.xpose.msra.mxu0 %v1339_v48  ;;  %1370 = vmatpush3.bf16.msra.mxu1 %v1369_v13 }
 0x1aa   :  { %v356_v51 = vpop.f32.mrb[44].mxu0  ;;  %1371 = vmatprep.subr.bf16.mxu1 %v1600_v36  ;;  %1341 = vmatprep.subr.bf16.mxu0 %v1600_v36 }
 0x1ab   :  { %v1831_v52 = vpop.f32.mrb[45].mxu0 }
 0x1ad   :  { %1373 = vmatpush3.bf16.msra.mxu1 %v1372_v19  ;;  %v982_v19 = vld [vmem:[#allocation11] ss:$0 sm:$0xff] }
 0x1ae   :  { %v362_v53 = vpop.f32.mrb[46].mxu0  ;;  %1374 = vmatprep.subr.bf16.mxu1 %v1600_v36 }
 0x1af   :  { %v1342_v54 = vpack.c.bf16 %v362_v53, %v356_v51  ;;  %v1834_v55 = vpop.f32.mrb[47].mxu0 }
 0x1b0   :  { %v1390_v56 = vpack.c.bf16 %v1834_v55, %v1831_v52 }
 0x1b1   :  { %1343 = vmatpush3.bf16.xpose.msra.mxu0 %v1342_v54  ;;  %1376 = vmatpush3.bf16.msra.mxu1 %v1375_v25 }
 0x1b2   :  { %v368_v58 = vpop.f32.mrb[48].mxu0  ;;  %1377 = vmatprep.subr.bf16.mxu1 %v1600_v36  ;;  %1344 = vmatprep.subr.bf16.mxu0 %v1600_v36 }
 0x1b3   :  { %v1840_v59 = vpop.f32.mrb[49].mxu0 }
 0x1b5   :  { %1379 = vmatpush3.bf16.msra.mxu1 %v1378_v31 }
 0x1b6   :  { %v374_v60 = vpop.f32.mrb[50].mxu0  ;;  %1380 = vmatprep.subr.bf16.mxu1 %v1600_v36 }
 0x1b7   :  { %v1345_v61 = vpack.c.bf16 %v374_v60, %v368_v58  ;;  %v1843_v62 = vpop.f32.mrb[51].mxu0 }
 0x1b8   :  { %v1393_v63 = vpack.c.bf16 %v1843_v62, %v1840_v59 }
 0x1b9   :  { %1346 = vmatpush3.bf16.xpose.msra.mxu0 %v1345_v61 }
 0x1ba   :  { %v380_v1 = vpop.f32.mrb[52].mxu0  ;;  %1347 = vmatprep.subr.bf16.mxu0 %v1600_v36 }
 0x1bb   :  { %v382_v2 = vpop.f32.mrb[53].mxu0 }
 0x1be   :  { %v386_v3 = vpop.f32.mrb[54].mxu0 }
 0x1bf   :  { %v1348_v4 = vpack.c.bf16 %v386_v3, %v380_v1  ;;  %v388_v5 = vpop.f32.mrb[55].mxu0 }
 0x1c0   :  { %v1396_v6 = vpack.c.bf16 %v388_v5, %v382_v2 }
 0x1c1   :  { %1349 = vmatpush3.bf16.xpose.msra.mxu0 %v1348_v4 }
 0x1c2   :  { %v392_v7 = vpop.f32.mrb[56].mxu0  ;;  %1350 = vmatprep.subr.bf16.mxu0 %v1600_v36 }
 0x1c3   :  { %v394_v8 = vpop.f32.mrb[57].mxu0 }
 0x1c6   :  { %v398_v9 = vpop.f32.mrb[58].mxu0 }
 0x1c7   :  { %v1351_v10 = vpack.c.bf16 %v398_v9, %v392_v7  ;;  %v400_v11 = vpop.f32.mrb[59].mxu0 }
 0x1c8   :  { %v1399_v12 = vpack.c.bf16 %v400_v11, %v394_v8 }
 0x1c9   :  { %1352 = vmatpush3.bf16.xpose.msra.mxu0 %v1351_v10 }
 0x1ca   :  { %v404_v13 = vpop.f32.mrb[60].mxu0  ;;  %1353 = vmatprep.subr.bf16.mxu0 %v1600_v36 }
 0x1cb   :  { %v406_v14 = vpop.f32.mrb[61].mxu0 }
 0x1ce   :  { %v410_v15 = vpop.f32.mrb[62].mxu0 }
 0x1cf   :  { %v1354_v16 = vpack.c.bf16 %v410_v15, %v404_v13  ;;  %v412_v17 = vpop.f32.mrb[63].mxu0 }
 0x1d0   :  { %v1402_v18 = vpack.c.bf16 %v412_v17, %v406_v14 }
 0x1d1   :  { %1355 = vmatpush3.bf16.xpose.msra.mxu0 %v1354_v16 }
 0x1d8   :  { %1172 = vmatmul.mubr.f32.vlgmr.msra.gmra.mrb[64].mxu0 %v1773_v57 }
 0x26b   :  { %v709_v20 = vpop.f32.mrb[2].mxu1 }
 0x26c   :  { %v710_v21 = vadd.f32 %v982_v19, %v709_v20  ;;  %v1138_v22 = vpop.f32.mrb[3].mxu1 }
 0x26e   :  { %783 = vmax.xlane.f32.xlu0 %v710_v21 }
 0x2ab   :  { %v779_v23 = vpop.f32.mrb[64].mxu0 }
 0x2ac   :  { %v780_v24 = vadd.f32 %v982_v19, %v779_v23  ;;  %v1173_v25 = vpop.f32.mrb[65].mxu0 }
 0x2ae   :  { %785 = vmax.xlane.f32.xlu0 %v780_v24 }
 0x2fb   :  { %v784_v26 = vpop.xlane.xlu0 %783 }
 0x2fc   :  { %v787_v27 = vsub.f32 %v710_v21, %v784_v26 }
 0x2fe   :  { %v789_v28 = vmul.f32 1.442695, %v787_v27 }
 0x300   :  { %1418 = vpow2.f32 %v789_v28 }
 0x30a   :  { %v1419_v29 = vpop.eup %1418 }
 0x30b   :  { %793 = vadd.xlane.f32.xlu1 %v1419_v29 }
 0x33b   :  { %v786_v30 = vpop.xlane.xlu0 %785 }
 0x33c   :  { %v788_v31 = vsub.f32 %v780_v24, %v786_v30 }
 0x33e   :  { %v791_v32 = vmul.f32 1.442695, %v788_v31 }
 0x340   :  { %1420 = vpow2.f32 %v791_v32 }
 0x34a   :  { %v1421_v57 = vpop.eup %1420 }
 0x34b   :  { %795 = vadd.xlane.f32.xlu1 %v1421_v57 }
 0x398   :  { %v794_v34 = vpop.xlane.xlu1 %793 }
 0x399   :  { %1422 = vrcp.f32 %v794_v34 }
 0x3a3   :  { %v1423_v35 = vpop.eup %1422 }
 0x3a4   :  { %v798_v39 = vmul.f32 %v1423_v35, %v1419_v29 }
 0x3a6   :  { %1207 = vmatmul.mubr.f32.vlgmr.msra.gmra.mrb[4].mxu1 %v798_v39  ;;  %942 = vst.msk [vmem:[#allocation12] sm:$0xff] %vm941_vm1, %v798_v39 }
 0x3a7   :  { %1382 = vmatpush3.bf16.msra.mxu1 %v1381_v38  ;;  %1241 = vmatprep.mubr.msk.f32.mxu1 %vm1601_vm0, %v1599_v0 }
 0x3a8   :  { %1383 = vmatprep.subr.bf16.mxu1 %v1600_v36 }
 0x3ab   :  { %1385 = vmatpush3.bf16.msra.mxu1 %v1384_v44 }
 0x3ac   :  { %1386 = vmatprep.subr.bf16.mxu1 %v1600_v36 }
 0x3af   :  { %1388 = vmatpush3.bf16.msra.mxu1 %v1387_v50 }
 0x3b0   :  { %1389 = vmatprep.subr.bf16.mxu1 %v1600_v36 }
 0x3b3   :  { %1391 = vmatpush3.bf16.msra.mxu1 %v1390_v56 }
 0x3b4   :  { %1392 = vmatprep.subr.bf16.mxu1 %v1600_v36 }
 0x3b7   :  { %1394 = vmatpush3.bf16.msra.mxu1 %v1393_v63 }
 0x3b8   :  { %1395 = vmatprep.subr.bf16.mxu1 %v1600_v36 }
 0x3bb   :  { %1397 = vmatpush3.bf16.msra.mxu1 %v1396_v6 }
 0x3bc   :  { %1398 = vmatprep.subr.bf16.mxu1 %v1600_v36 }
 0x3bf   :  { %1400 = vmatpush3.bf16.msra.mxu1 %v1399_v12 }
 0x3c0   :  { %1401 = vmatprep.subr.bf16.mxu1 %v1600_v36 }
 0x3c3   :  { %1403 = vmatpush3.bf16.msra.mxu1 %v1402_v18 }
 0x3d8   :  { %v796_v0 = vpop.xlane.xlu1 %795 }
 0x3d9   :  { %1424 = vrcp.f32 %v796_v0 }
 0x3e3   :  { %v1425_v33 = vpop.eup %1424 }
 0x3e4   :  { %v800_v37 = vmul.f32 %v1425_v33, %v1421_v57 }
 0x3e6   :  { %1242 = vmatmul.mubr.f32.vlgmr.msra.gmra.mrb[6].mxu1 %v800_v37  ;;  %943 = vst.msk [vmem:[#allocation12 + $0x8] sm:$0xff] %vm941_vm1, %v800_v37 }
 0x3e7   :  { %1547 = shalt.err (!%p1544_p2)
}
 0x3e8   :  { %s1548_s16 = scalar_lea.hbm %s1912_s5, 256 }
 0x3e9   :  { %p1549_p3 = scmp.ne.s32.totalorder %s1912_s5, %s1548_s16  ;;  %p1552_p4 = scmp.lt.u32.totalorder %s1548_s16, %s1912_s5 }
 0x3eb   :  { %p1554_p5 = pnand %p1552_p4, %p1549_p3 }
 0x3ed   :  { %1557 = shalt.err (!%p1554_p5)
}
 0x3ee   :  { %958 = dma.vmem_to_hbm [thread:$0]  %s953_s3, 256, %s1912_s5, [#allocation5], %s1592_s9, %s1592_s9, %s1593_s10   ;;  %vm944_vm2 = vcmask 130048  }
 0x3ef   :  { %s1603_s0 = smov [#allocation13]  }
 0x3f0   :  { %s964_s22 = sshll.u32 %s1603_s0, 4  ;;  %s965_s22 = int_to_ptr.vmem [resolvable:$true] %s964_s22 }
 0x3f1   :  { %s1558_s23 = scalar_lea.vmem %s965_s22, 256  ;;  %p1563_p7 = scmp.lt.s32.totalorder %s965_s22, %s965_s22 }
 0x3f2   :  { %p1559_p6 = scmp.ne.s32.totalorder %s965_s22, %s1558_s23  ;;  %p1564_p8 = scmp.lt.s32.totalorder %s1558_s23, %s1558_s23 }
 0x3f4   :  { %p1565_p9 = por %p1564_p8, %p1563_p7 }
 0x3f6   :  { %p1566_p10 = pnand %p1565_p9, %p1559_p6 }
 0x479   :  { %v867_v36 = vpop.f32.mrb[4].mxu1 }
 0x47a   :  { %945 = vst.msk [vmem:[#allocation13] sm:$0xff] %vm944_vm2, %v867_v36  ;;  %v1208_v38 = vpop.f32.mrb[5].mxu1 }
 0x4b9   :  { %v937_v40 = vpop.f32.mrb[6].mxu1 }
 0x4ba   :  { %946 = vst.msk [vmem:[#allocation13 + $0x8] sm:$0xff] %vm944_vm2, %v937_v40  ;;  %v1243_v41 = vpop.f32.mrb[7].mxu1 }
 0x4bb   :  { %1569 = shalt.err (!%p1566_p10)
}
 0x4bc   :  { %s1570_s5 = scalar_lea.hbm %s1913_s6, 256 }
 0x4bd   :  { %p1571_p11 = scmp.ne.s32.totalorder %s1913_s6, %s1570_s5  ;;  %p1574_p12 = scmp.lt.u32.totalorder %s1570_s5, %s1913_s6 }
 0x4bf   :  { %p1576_p13 = pnand %p1574_p12, %p1571_p11 }
 0x4c1   :  { %1579 = shalt.err (!%p1576_p13)
}
 0x4c2   :  { %970 = dma.vmem_to_hbm [thread:$0]  %s965_s22, 256, %s1913_s6, [#allocation14], %s1592_s9, %s1592_s9, %s1593_s10  }
 0x4c3   :  { %1586 = dma.done.wait [#allocation5], 256  }
 0x4c4   :  { %1587 = vsyncadd [#allocation5], 4294967040 }
 0x4c5   :  { %1588 = dma.done.wait [#allocation14], 256  }
 0x4c6   :  { %1589 = vsyncadd [#allocation14], 4294967040 }
 0x4c7   :  { %977 = vsyncpa [#allocation4], 1 }
 0x4c8   :  { %978 = vsyncpa [#allocation7], 1 }
 0x4c9   :  { %979 = vsyncpa [#allocation10], 1 }
 0x4ca   :  { %980 = vsyncpa [#allocation5], 1 }
 0x4cb   :  { %981 = vsyncpa [#allocation14], 1 }

</bundles_post_ra>
